<compile_context>
chip_gen: v5e
topology: v5e:2x2
jax: 0.10.0
libtpu: 0.0.40
codegen_flags: <defaults>
</compile_context>

<pallas_src>
import jax
import jax.numpy as jnp
from jax.experimental import pallas as pl
from jax.experimental.pallas import tpu as pltpu

SUBLANES = 8  # batch-tile granularity


def _linear_sub_relu_kernel(x_ref, w_ref, b_ref, o_ref):
    # y = relu(x @ W + (b - 1));  the "-1" is pre-folded into b.
    y = jnp.dot(x_ref[...], w_ref[...], preferred_element_type=jnp.float32)
    y = y + b_ref[...]                      # (1, OUT) broadcast over rows, f32
    o_ref[...] = jnp.maximum(y, 0.0).astype(o_ref.dtype)


def prepare_params(w, b, *, param_dtype=jnp.float32):
    """One-time parameter prep.

    w: (IN, OUT) — NOTE: transpose of PyTorch nn.Linear's (out, in) storage;
       apply .T when importing real checkpoint weights.
    b: (OUT,)
    Returns (w_p (IN, OUT) in param_dtype, b_p (1, OUT) f32 with '-1' folded).
    """
    in_f, out_f = w.shape
    w_p = w.astype(param_dtype)
    b_p = (b.astype(jnp.float32) - 1.0).reshape(1, out_f)   # fold the subtract
    return w_p, b_p


def _round_up(x, m):
    return ((x + m - 1) // m) * m


def linear_sub_relu(x, w_p, b_p, *, tm=1024):
    """Computes relu(x @ W + b - 1) with a fused Pallas kernel."""
    B, in_f = x.shape
    in_w, out_f = w_p.shape
    assert in_f == in_w, "feature-dim mismatch"
    x = x.astype(w_p.dtype)          # bf16 streaming iff params are bf16
    out_dtype = jnp.float32

    if B <= tm:
        # --- Small-batch path: no grid, whole arrays in VMEM, no padding. ---
        return pl.pallas_call(
            _linear_sub_relu_kernel,
            out_shape=jax.ShapeDtypeStruct((B, out_f), out_dtype),
            in_specs=[
                pl.BlockSpec(memory_space=pltpu.MemorySpace.VMEM),
                pl.BlockSpec(memory_space=pltpu.MemorySpace.VMEM),
                pl.BlockSpec(memory_space=pltpu.MemorySpace.VMEM),
            ],
            out_specs=pl.BlockSpec(memory_space=pltpu.MemorySpace.VMEM),
        )(x, w_p, b_p)

    # --- Large-batch path: tile over batch only; ragged last block is fine. ---
    n_tiles = pl.cdiv(B, tm)
    if n_tiles > 1 and n_tiles % 2 == 1:
        n_tiles += 1                 # v7x: even step count -> even 2-TC split
    tm_eff = max(SUBLANES, _round_up(pl.cdiv(B, n_tiles), SUBLANES))
    grid = (pl.cdiv(B, tm_eff),)

    return pl.pallas_call(
        _linear_sub_relu_kernel,
        out_shape=jax.ShapeDtypeStruct((B, out_f), out_dtype),
        grid=grid,
        in_specs=[
            pl.BlockSpec((tm_eff, in_f), lambda i: (i, 0)),   # streamed rows
            pl.BlockSpec((in_f, out_f), lambda i: (0, 0)),    # resident weights
            pl.BlockSpec((1, out_f), lambda i: (0, 0)),       # resident bias
        ],
        out_specs=pl.BlockSpec((tm_eff, out_f), lambda i: (i, 0)),
        compiler_params=pltpu.CompilerParams(
            dimension_semantics=("parallel",)),
    )(x, w_p, b_p)


def reference(x, w, b):
    return jnp.maximum(x @ w + b - 1.0, 0.0)


if __name__ == "__main__":
    key = jax.random.PRNGKey(0)
    kx, kw, kb, kx2 = jax.random.split(key, 4)

    B, IN, OUT = 8, 20, 20
    x = jax.random.normal(kx, (B, IN), dtype=jnp.float32)
    # Deterministic "Linear(20, 20)" parameters, kept in (in, out) layout.
    w = jax.random.normal(kw, (IN, OUT), dtype=jnp.float32) * 0.1
    b = jax.random.normal(kb, (OUT,), dtype=jnp.float32) * 0.1

    # --- f32 (spec-exact) parameters ---
    w_p, b_p = prepare_params(w, b)

    # Small-batch (no-grid) path.
    out = jax.block_until_ready(linear_sub_relu(x, w_p, b_p))
    ref = reference(x, w, b)
    assert out.shape == (B, OUT)
    assert jnp.allclose(out, ref, atol=1e-5, rtol=1e-5), "mismatch (small path)"

    # Large-batch tiled path with a ragged last block (2500 rows, tm=1024
    # -> even 4-step grid of 632-row tiles).
    B2 = 2500
    x2 = jax.random.normal(kx2, (B2, IN), dtype=jnp.float32)
    out2 = jax.block_until_ready(linear_sub_relu(x2, w_p, b_p, tm=1024))
    ref2 = reference(x2, w, b)
    assert out2.shape == (B2, OUT)
    assert jnp.allclose(out2, ref2, atol=1e-5, rtol=1e-5), "mismatch (tiled path)"

    # Optional bf16 operand streaming (halves HBM reads; f32 accumulate).
    w_bf, b_bf = prepare_params(w, b, param_dtype=jnp.bfloat16)
    out3 = jax.block_until_ready(linear_sub_relu(x2, w_bf, b_bf, tm=1024))
    assert out3.shape == (B2, OUT)
    assert jnp.allclose(out3, ref2, atol=5e-2, rtol=5e-2), "mismatch (bf16 path)"

    print("KERNEL_OK")
</pallas_src>

<mosaic_0001>
module attributes {stable_mosaic.version = 11 : i64} {
  func.func @_linear_sub_relu_kernel(%arg0: memref<8x20xf32, #tpu.memory_space<vmem>>, %arg1: memref<20x20xf32, #tpu.memory_space<vmem>>, %arg2: memref<1x20xf32, #tpu.memory_space<vmem>>, %arg3: memref<8x20xf32, #tpu.memory_space<vmem>>) attributes {dimension_semantics = [], scalar_prefetch = 0 : i64, scratch_operands = 0 : i64, tpu.core_type = #tpu.core_type<tc>} {
    %c0 = arith.constant 0 : index
    %c0_0 = arith.constant 0 : index
    %0 = vector.load %arg0[%c0, %c0_0] : memref<8x20xf32, #tpu.memory_space<vmem>>, vector<8x20xf32>
    %c0_1 = arith.constant 0 : index
    %c0_2 = arith.constant 0 : index
    %1 = vector.load %arg1[%c0_1, %c0_2] : memref<20x20xf32, #tpu.memory_space<vmem>>, vector<20x20xf32>
    %cst = arith.constant dense<0.000000e+00> : vector<8x20xf32>
    %2 = tpu.matmul %0, %1, %cst {dimension_numbers = #tpu.dot_dimension_numbers<[1], [0], [0], [1], [0, 0, 1, 1], [], []>} : vector<8x20xf32>, vector<20x20xf32>, vector<8x20xf32> -> vector<8x20xf32>
    %c0_3 = arith.constant 0 : index
    %c0_4 = arith.constant 0 : index
    %3 = vector.load %arg2[%c0_3, %c0_4] : memref<1x20xf32, #tpu.memory_space<vmem>>, vector<1x20xf32>
    %4 = vector.broadcast %3 : vector<1x20xf32> to vector<8x20xf32>
    %5 = arith.addf %2, %4 : vector<8x20xf32>
    %cst_5 = arith.constant 0.000000e+00 : f32
    %6 = vector.broadcast %cst_5 : f32 to vector<8x20xf32>
    %7 = arith.maximumf %5, %6 : vector<8x20xf32>
    %c0_6 = arith.constant 0 : index
    %c0_7 = arith.constant 0 : index
    %8 = vector.load %arg3[%c0_6, %c0_7] : memref<8x20xf32, #tpu.memory_space<vmem>>, vector<8x20xf32>
    tpu.vector_store %arg3[%c0_6, %c0_7], %7 {strides = array<i32>} : memref<8x20xf32, #tpu.memory_space<vmem>>, vector<8x20xf32>,
    return
  }
}

</mosaic_0001>

<bundles_post_ra>
// kernel: tpu_custom_call.1
= control target key start
LH: loop header
LB: loop body
LE: loop exit
PB: predicated region body
PF: predicated region fallthrough
CT: control target
= control target key end

     0   :  { %8 = vsyncpa [#allocation3], 0  ;;  %s224_s0 = inlined_call_operand.hbm [shape: f32[8,20], index: 0, kind: input, shape index: {}]   ;;  %s225_s1 = inlined_call_operand.hbm [shape: f32[20,20], index: 1, kind: input, shape index: {}]   ;;  %s226_s2 = inlined_call_operand.vmem [shape: f32[1,20], index: 2, kind: input, shape index: {}]   ;;  %s227_s3 = inlined_call_operand.hbm [shape: f32[8,20], index: 3, kind: output, shape index: {}]  }
   0x1   :  { %9 = vsyncpa [#allocation6], 0 }
   0x2   :  { %10 = vsyncpa [#allocation4], 0  ;;  %s16_s14 = sshll.u32 %s224_s0, 4  ;;  %s187_s15 = smov [#allocation2]   ;;  %s17_s14 = int_to_ptr.hbm [resolvable:$true] %s16_s14 }
   0x3   :  { %s18_s16 = sshll.u32 %s187_s15, 4  ;;  %s26_s19 = sshll.u32 %s225_s1, 4  ;;  %s19_s16 = int_to_ptr.vmem [resolvable:$true] %s18_s16  ;;  %s27_s19 = int_to_ptr.hbm [resolvable:$true] %s26_s19 }
   0x4   :  { %21 = dma.hbm_to_vmem [thread:$0]  %s17_s14, 128, %s19_s16, [#allocation3]  }
   0x5   :  { %s188_s20 = smov [#allocation5]   ;;  %s189_s22 = smov 128  }
   0x6   :  { %s28_s21 = sshll.u32 %s188_s20, 4  ;;  %s190_s23 = smov 8   ;;  %s29_s21 = int_to_ptr.vmem [resolvable:$true] %s28_s21 }
   0x7   :  { %34 = dma.hbm_to_vmem [thread:$0]  %s27_s19, 384, %s29_s21, [#allocation6], %s189_s22, %s189_s22, %s190_s23  }
   0x8   :  { %181 = dma.done.wait [#allocation3], 128  }
   0x9   :  { %182 = vsyncadd [#allocation3], 4294967168 }
   0xa   :  { %183 = dma.done.wait [#allocation6], 384  }
   0xb   :  { %184 = vsyncadd [#allocation6], 4294966912  ;;  %vm57_vm0 = vcmask 1043456   ;;  %v48_v0 = vld [vmem:[#allocation5 + $0x10] sm:$0xf]  ;;  %v47_v1 = vld [vmem:[#allocation5 + $0x8] sm:$0xff] }
   0xc   :  { %101 = vmatpush.msk.msra.mxu0 %vm57_vm0, %v48_v0  ;;  %v46_v2 = vld [vmem:[#allocation5] sm:$0xff]  ;;  %v45_v3 = vld [vmem:[#allocation2] sm:$0xff]  ;;  %vm53_vm1 = vcmask 162816   ;;  %s191_s24 = smov [#allocation7]   ;;  %s90_s28 = sshll.u32 %s227_s3, 4  ;;  %s91_s28 = int_to_ptr.hbm [resolvable:$true] %s90_s28 }
   0xd   :  { %v108_v4 = vld [vmem:[%s226_s2] ss:$0 sm:$0xff]  ;;  %s88_s25 = sshll.u32 %s191_s24, 4  ;;  %s89_s25 = int_to_ptr.vmem [resolvable:$true] %s88_s25 }
   0xe   :  { %75 = vmatpush.msra.mxu0 %v47_v1 }
  0x10   :  { %76 = vmatpush.msra.mxu0 %v46_v2 }
  0x11   :  { %102 = vmatmul.msk.f32.vlgmr.msra.gmra.mxu0 %vm53_vm1, %v45_v3 }
  0x8e   :  { %v78_v5 = vpop.f32.mrf.mxu0 }
  0x8f   :  { %v79_v6 = vadd.f32 %v108_v4, %v78_v5 }
  0x91   :  { %v81_v7 = vmax.f32 %v79_v6, 0.0 }
  0x93   :  { %82 = vst.msk [vmem:[#allocation7] sm:$0xff] %vm53_vm1, %v81_v7 }
  0x94   :  { %93 = dma.vmem_to_hbm [thread:$0]  %s89_s25, 128, %s91_s28, [#allocation4]  }
  0x95   :  { %185 = dma.done.wait [#allocation4], 128  }
  0x96   :  { %186 = vsyncadd [#allocation4], 4294967168 }
  0x97   :  { %98 = vsyncpa [#allocation3], 1 }
  0x98   :  { %99 = vsyncpa [#allocation6], 1 }
  0x99   :  { %100 = vsyncpa [#allocation4], 1 }

</bundles_post_ra>
